<compile_context>
chip_gen: v6e
topology: v6e:2x2x1
jax: 0.10.0
libtpu: 0.0.40
codegen_flags: <defaults>
</compile_context>

<pallas_src>
import jax
import jax.numpy as jnp
from jax.experimental import pallas as pl
from jax.experimental.pallas import tpu as pltpu


def qnet_kernel(x_ref,
                w1_ref, b1_ref,
                w2_ref, b2_ref,
                w3_ref, b3_ref,
                w4_ref, b4_ref,
                out_ref):
    # x tile arrives in bf16 (halves HBM->VMEM traffic). Matmuls run on the
    # MXU in bf16 with f32 accumulation; everything else stays f32.
    x = x_ref[...]

    # Load biases once per invocation ([1, H] rows broadcast over the batch).
    b1 = b1_ref[...]
    b2 = b2_ref[...]
    b3 = b3_ref[...]
    b4 = b4_ref[...]

    # Layer 1: obs -> 32, ReLU
    h = jnp.dot(x, w1_ref[...], preferred_element_type=jnp.float32) + b1
    h = jnp.maximum(h, 0.0)
    # Layer 2: 32 -> 64, ReLU
    h = jnp.dot(h.astype(jnp.bfloat16), w2_ref[...],
                preferred_element_type=jnp.float32) + b2
    h = jnp.maximum(h, 0.0)
    # Layer 3: 64 -> 16, ReLU
    h = jnp.dot(h.astype(jnp.bfloat16), w3_ref[...],
                preferred_element_type=jnp.float32) + b3
    h = jnp.maximum(h, 0.0)
    # Layer 4: 16 -> action_dims (raw logits)
    logits = jnp.dot(h.astype(jnp.bfloat16), w4_ref[...],
                     preferred_element_type=jnp.float32) + b4

    # Categorical(logits=...) normalization: max-stabilized log-softmax (f32).
    m = jnp.max(logits, axis=-1, keepdims=True)
    z = logits - m
    lse = jnp.log(jnp.sum(jnp.exp(z), axis=-1, keepdims=True))
    logprobs = z - lse

    # Single output block: [0] = raw logits, [1] = normalized log-probs.
    out_ref[0, :, :] = logits
    out_ref[1, :, :] = logprobs


def _round_up(n, m):
    return ((n + m - 1) // m) * m


def qnet_forward(x, params, *, block_b=1024):
    """x: [B, obs_dims]. params: dict of (wN, bN), wN stored [in, out].

    Returns (logits, logprobs), both [B, action_dims] f32; logprobs are the
    normalized log-probabilities of Categorical(logits=logits).
    """
    B, obs_dims = x.shape
    act_dims = params["w4"].shape[1]

    # Batch tile: at least one (8, lane) sublane tile, at most block_b rows.
    tb = min(block_b, _round_up(B, 8))
    b_padded = _round_up(B, tb)

    xb = x.astype(jnp.bfloat16)
    if b_padded != B:
        xb = jnp.pad(xb, ((0, b_padded - B), (0, 0)))

    # Weights bf16 for the MXU; biases stay f32 as [1, H] rows.
    w1 = params["w1"].astype(jnp.bfloat16)
    w2 = params["w2"].astype(jnp.bfloat16)
    w3 = params["w3"].astype(jnp.bfloat16)
    w4 = params["w4"].astype(jnp.bfloat16)
    b1 = params["b1"].reshape(1, -1).astype(jnp.float32)
    b2 = params["b2"].reshape(1, -1).astype(jnp.float32)
    b3 = params["b3"].reshape(1, -1).astype(jnp.float32)
    b4 = params["b4"].reshape(1, -1).astype(jnp.float32)

    grid = (pl.cdiv(b_padded, tb),)

    def x_map(i):          # x / output tiles march over the batch axis
        return (i, 0)

    def out_map(i):
        return (0, i, 0)

    def const_map(i):      # weights & biases: constant block -> VMEM-resident
        return (0, 0)

    in_specs = [
        pl.BlockSpec((tb, obs_dims), x_map),
        pl.BlockSpec(w1.shape, const_map),
        pl.BlockSpec(b1.shape, const_map),
        pl.BlockSpec(w2.shape, const_map),
        pl.BlockSpec(b2.shape, const_map),
        pl.BlockSpec(w3.shape, const_map),
        pl.BlockSpec(b3.shape, const_map),
        pl.BlockSpec(w4.shape, const_map),
        pl.BlockSpec(b4.shape, const_map),
    ]
    out_specs = pl.BlockSpec((2, tb, act_dims), out_map)

    out = pl.pallas_call(
        qnet_kernel,
        grid=grid,
        in_specs=in_specs,
        out_specs=out_specs,
        out_shape=jax.ShapeDtypeStruct((2, b_padded, act_dims), jnp.float32),
        compiler_params=pltpu.CompilerParams(
            dimension_semantics=("parallel",)),
    )(xb, w1, b1, w2, b2, w3, b3, w4, b4)

    logits = out[0, :B, :]
    logprobs = out[1, :B, :]
    return logits, logprobs


def init_params(key, obs_dims, action_dims):
    """Deterministic init matching the layer shapes of QNet.__init__."""
    dims = [(obs_dims, 32), (32, 64), (64, 16), (16, action_dims)]
    params = {}
    for i, (fan_in, fan_out) in enumerate(dims, start=1):
        key, kw, kb = jax.random.split(key, 3)
        bound = 1.0 / jnp.sqrt(fan_in)  # PyTorch Linear default uniform bound
        params[f"w{i}"] = jax.random.uniform(
            kw, (fan_in, fan_out), jnp.float32, -bound, bound)
        params[f"b{i}"] = jax.random.uniform(
            kb, (fan_out,), jnp.float32, -bound, bound)
    return params


if __name__ == "__main__":
    obs_dims = 16
    action_dims = 4
    batch = 8

    key = jax.random.PRNGKey(0)
    key, kx = jax.random.split(key)
    x = jax.random.normal(kx, (batch, obs_dims), dtype=jnp.float32)
    params = init_params(key, obs_dims, action_dims)

    logits, logprobs = qnet_forward(x, params)
    jax.block_until_ready((logits, logprobs))

    # Reference that mimics the kernel's precision (bf16 MXU inputs, f32 acc).
    def ref_bf16(x, p):
        def lin(h, w, b):
            return jnp.dot(h.astype(jnp.bfloat16), w.astype(jnp.bfloat16),
                           preferred_element_type=jnp.float32) + b
        h = jnp.maximum(lin(x, p["w1"], p["b1"]), 0.0)
        h = jnp.maximum(lin(h, p["w2"], p["b2"]), 0.0)
        h = jnp.maximum(lin(h, p["w3"], p["b3"]), 0.0)
        lg = lin(h, p["w4"], p["b4"])
        return lg, jax.nn.log_softmax(lg, axis=-1)

    # Pure-f32 reference of the original PyTorch semantics.
    def ref_f32(x, p):
        h = jnp.maximum(x @ p["w1"] + p["b1"], 0.0)
        h = jnp.maximum(h @ p["w2"] + p["b2"], 0.0)
        h = jnp.maximum(h @ p["w3"] + p["b3"], 0.0)
        lg = h @ p["w4"] + p["b4"]
        return lg, jax.nn.log_softmax(lg, axis=-1)

    rb_logits, rb_logprobs = ref_bf16(x, params)
    rf_logits, rf_logprobs = ref_f32(x, params)

    # Tight check vs. the precision-matched reference.
    assert jnp.allclose(logits, rb_logits, atol=1e-3, rtol=1e-3)
    assert jnp.allclose(logprobs, rb_logprobs, atol=1e-3, rtol=1e-3)
    # Loose check vs. the original f32 semantics (bf16 MXU rounding only).
    assert jnp.allclose(logits, rf_logits, atol=5e-2, rtol=5e-2)
    assert jnp.allclose(logprobs, rf_logprobs, atol=5e-2, rtol=5e-2)
    # Probabilities of the Categorical sum to 1.
    assert jnp.allclose(jnp.sum(jnp.exp(logprobs), axis=-1), 1.0, atol=1e-5)

    print("KERNEL_OK")
</pallas_src>

<mosaic_0001>
module attributes {stable_mosaic.version = 11 : i64} {
  func.func @qnet_kernel(%arg0: i32, %arg1: memref<8x16xbf16, #tpu.memory_space<vmem>>, %arg2: memref<16x32xbf16, #tpu.memory_space<vmem>>, %arg3: memref<1x32xf32, #tpu.memory_space<vmem>>, %arg4: memref<32x64xbf16, #tpu.memory_space<vmem>>, %arg5: memref<1x64xf32, #tpu.memory_space<vmem>>, %arg6: memref<64x16xbf16, #tpu.memory_space<vmem>>, %arg7: memref<1x16xf32, #tpu.memory_space<vmem>>, %arg8: memref<16x4xbf16, #tpu.memory_space<vmem>>, %arg9: memref<1x4xf32, #tpu.memory_space<vmem>>, %arg10: memref<2x8x4xf32, #tpu.memory_space<vmem>>) attributes {dimension_semantics = [#tpu.dimension_semantics<parallel>], iteration_bounds = array<i64: 1>, scalar_prefetch = 0 : i64, scratch_operands = 0 : i64, tpu.core_type = #tpu.core_type<tc>, window_params = [{transform_indices = @transform_0, window_bounds = array<i64: 8, 16>}, {pipeline_mode = #tpu.pipeline_mode<synchronous>, transform_indices = @transform_1, window_bounds = array<i64: 16, 32>}, {pipeline_mode = #tpu.pipeline_mode<synchronous>, transform_indices = @transform_2, window_bounds = array<i64: 1, 32>}, {pipeline_mode = #tpu.pipeline_mode<synchronous>, transform_indices = @transform_3, window_bounds = array<i64: 32, 64>}, {pipeline_mode = #tpu.pipeline_mode<synchronous>, transform_indices = @transform_4, window_bounds = array<i64: 1, 64>}, {pipeline_mode = #tpu.pipeline_mode<synchronous>, transform_indices = @transform_5, window_bounds = array<i64: 64, 16>}, {pipeline_mode = #tpu.pipeline_mode<synchronous>, transform_indices = @transform_6, window_bounds = array<i64: 1, 16>}, {pipeline_mode = #tpu.pipeline_mode<synchronous>, transform_indices = @transform_7, window_bounds = array<i64: 16, 4>}, {pipeline_mode = #tpu.pipeline_mode<synchronous>, transform_indices = @transform_8, window_bounds = array<i64: 1, 4>}, {transform_indices = @transform_9, window_bounds = array<i64: 2, 8, 4>}]} {
    %c0 = arith.constant 0 : index
    %c0_0 = arith.constant 0 : index
    %0 = vector.load %arg1[%c0, %c0_0] : memref<8x16xbf16, #tpu.memory_space<vmem>>, vector<8x16xbf16>
    %c0_1 = arith.constant 0 : index
    %c0_2 = arith.constant 0 : index
    %1 = vector.load %arg3[%c0_1, %c0_2] : memref<1x32xf32, #tpu.memory_space<vmem>>, vector<1x32xf32>
    %c0_3 = arith.constant 0 : index
    %c0_4 = arith.constant 0 : index
    %2 = vector.load %arg5[%c0_3, %c0_4] : memref<1x64xf32, #tpu.memory_space<vmem>>, vector<1x64xf32>
    %c0_5 = arith.constant 0 : index
    %c0_6 = arith.constant 0 : index
    %3 = vector.load %arg7[%c0_5, %c0_6] : memref<1x16xf32, #tpu.memory_space<vmem>>, vector<1x16xf32>
    %c0_7 = arith.constant 0 : index
    %c0_8 = arith.constant 0 : index
    %4 = vector.load %arg9[%c0_7, %c0_8] : memref<1x4xf32, #tpu.memory_space<vmem>>, vector<1x4xf32>
    %c0_9 = arith.constant 0 : index
    %c0_10 = arith.constant 0 : index
    %5 = vector.load %arg2[%c0_9, %c0_10] : memref<16x32xbf16, #tpu.memory_space<vmem>>, vector<16x32xbf16>
    %cst = arith.constant dense<0.000000e+00> : vector<8x32xf32>
    %6 = tpu.matmul %0, %5, %cst {dimension_numbers = #tpu.dot_dimension_numbers<[1], [0], [0], [1], [0, 0, 1, 1], [], []>} : vector<8x16xbf16>, vector<16x32xbf16>, vector<8x32xf32> -> vector<8x32xf32>
    %7 = vector.broadcast %1 : vector<1x32xf32> to vector<8x32xf32>
    %8 = arith.addf %6, %7 : vector<8x32xf32>
    %cst_11 = arith.constant 0.000000e+00 : f32
    %9 = vector.broadcast %cst_11 : f32 to vector<8x32xf32>
    %10 = arith.maximumf %8, %9 : vector<8x32xf32>
    %11 = arith.truncf %10 : vector<8x32xf32> to vector<8x32xbf16>
    %c0_12 = arith.constant 0 : index
    %c0_13 = arith.constant 0 : index
    %12 = vector.load %arg4[%c0_12, %c0_13] : memref<32x64xbf16, #tpu.memory_space<vmem>>, vector<32x64xbf16>
    %cst_14 = arith.constant dense<0.000000e+00> : vector<8x64xf32>
    %13 = tpu.matmul %11, %12, %cst_14 {dimension_numbers = #tpu.dot_dimension_numbers<[1], [0], [0], [1], [0, 0, 1, 1], [], []>} : vector<8x32xbf16>, vector<32x64xbf16>, vector<8x64xf32> -> vector<8x64xf32>
    %14 = vector.broadcast %2 : vector<1x64xf32> to vector<8x64xf32>
    %15 = arith.addf %13, %14 : vector<8x64xf32>
    %cst_15 = arith.constant 0.000000e+00 : f32
    %16 = vector.broadcast %cst_15 : f32 to vector<8x64xf32>
    %17 = arith.maximumf %15, %16 : vector<8x64xf32>
    %18 = arith.truncf %17 : vector<8x64xf32> to vector<8x64xbf16>
    %c0_16 = arith.constant 0 : index
    %c0_17 = arith.constant 0 : index
    %19 = vector.load %arg6[%c0_16, %c0_17] : memref<64x16xbf16, #tpu.memory_space<vmem>>, vector<64x16xbf16>
    %cst_18 = arith.constant dense<0.000000e+00> : vector<8x16xf32>
    %20 = tpu.matmul %18, %19, %cst_18 {dimension_numbers = #tpu.dot_dimension_numbers<[1], [0], [0], [1], [0, 0, 1, 1], [], []>} : vector<8x64xbf16>, vector<64x16xbf16>, vector<8x16xf32> -> vector<8x16xf32>
    %21 = vector.broadcast %3 : vector<1x16xf32> to vector<8x16xf32>
    %22 = arith.addf %20, %21 : vector<8x16xf32>
    %cst_19 = arith.constant 0.000000e+00 : f32
    %23 = vector.broadcast %cst_19 : f32 to vector<8x16xf32>
    %24 = arith.maximumf %22, %23 : vector<8x16xf32>
    %25 = arith.truncf %24 : vector<8x16xf32> to vector<8x16xbf16>
    %c0_20 = arith.constant 0 : index
    %c0_21 = arith.constant 0 : index
    %26 = vector.load %arg8[%c0_20, %c0_21] : memref<16x4xbf16, #tpu.memory_space<vmem>>, vector<16x4xbf16>
    %cst_22 = arith.constant dense<0.000000e+00> : vector<8x4xf32>
    %27 = tpu.matmul %25, %26, %cst_22 {dimension_numbers = #tpu.dot_dimension_numbers<[1], [0], [0], [1], [0, 0, 1, 1], [], []>} : vector<8x16xbf16>, vector<16x4xbf16>, vector<8x4xf32> -> vector<8x4xf32>
    %28 = vector.broadcast %4 : vector<1x4xf32> to vector<8x4xf32>
    %29 = arith.addf %27, %28 : vector<8x4xf32>
    %cst_23 = arith.constant dense<0xFF800000> : vector<8xf32>
    %30 = vector.multi_reduction <maximumf>, %29, %cst_23 [1] : vector<8x4xf32> to vector<8xf32>
    %31 = vector.shape_cast %30 : vector<8xf32> to vector<8x1xf32>
    %32 = vector.broadcast %31 : vector<8x1xf32> to vector<8x4xf32>
    %33 = arith.subf %29, %32 : vector<8x4xf32>
    %34 = math.exp %33 : vector<8x4xf32>
    %cst_24 = arith.constant dense<0.000000e+00> : vector<8xf32>
    %35 = vector.multi_reduction <add>, %34, %cst_24 [1] : vector<8x4xf32> to vector<8xf32>
    %36 = vector.shape_cast %35 : vector<8xf32> to vector<8x1xf32>
    %37 = math.log %36 : vector<8x1xf32>
    %38 = vector.broadcast %37 : vector<8x1xf32> to vector<8x4xf32>
    %39 = arith.subf %33, %38 : vector<8x4xf32>
    %c0_25 = arith.constant 0 : index
    %c0_26 = arith.constant 0 : index
    %c0_27 = arith.constant 0 : index
    %40 = vector.load %arg10[%c0_25, %c0_26, %c0_27] : memref<2x8x4xf32, #tpu.memory_space<vmem>>, vector<1x8x4xf32>
    %41 = vector.shape_cast %40 : vector<1x8x4xf32> to vector<8x4xf32>
    %42 = vector.shape_cast %29 : vector<8x4xf32> to vector<1x8x4xf32>
    tpu.vector_store %arg10[%c0_25, %c0_26, %c0_27], %42 {strides = array<i32>} : memref<2x8x4xf32, #tpu.memory_space<vmem>>, vector<1x8x4xf32>,
    %c1 = arith.constant 1 : index
    %c0_28 = arith.constant 0 : index
    %c0_29 = arith.constant 0 : index
    %43 = vector.load %arg10[%c1, %c0_28, %c0_29] : memref<2x8x4xf32, #tpu.memory_space<vmem>>, vector<1x8x4xf32>
    %44 = vector.shape_cast %43 : vector<1x8x4xf32> to vector<8x4xf32>
    %45 = vector.shape_cast %39 : vector<8x4xf32> to vector<1x8x4xf32>
    tpu.vector_store %arg10[%c1, %c0_28, %c0_29], %45 {strides = array<i32>} : memref<2x8x4xf32, #tpu.memory_space<vmem>>, vector<1x8x4xf32>,
    return
  }
  func.func @transform_0(%arg0: i32) -> (i32, i32) {
    %c0_i32 = arith.constant 0 : i32
    %c0_i32_0 = arith.constant 0 : i32
    return %arg0, %c0_i32 : i32, i32
  }
  func.func @transform_1(%arg0: i32) -> (i32, i32) {
    %c0_i32 = arith.constant 0 : i32
    %c0_i32_0 = arith.constant 0 : i32
    %c0_i32_1 = arith.constant 0 : i32
    return %c0_i32, %c0_i32_0 : i32, i32
  }
  func.func @transform_2(%arg0: i32) -> (i32, i32) {
    %c0_i32 = arith.constant 0 : i32
    %c0_i32_0 = arith.constant 0 : i32
    %c0_i32_1 = arith.constant 0 : i32
    return %c0_i32, %c0_i32_0 : i32, i32
  }
  func.func @transform_3(%arg0: i32) -> (i32, i32) {
    %c0_i32 = arith.constant 0 : i32
    %c0_i32_0 = arith.constant 0 : i32
    %c0_i32_1 = arith.constant 0 : i32
    return %c0_i32, %c0_i32_0 : i32, i32
  }
  func.func @transform_4(%arg0: i32) -> (i32, i32) {
    %c0_i32 = arith.constant 0 : i32
    %c0_i32_0 = arith.constant 0 : i32
    %c0_i32_1 = arith.constant 0 : i32
    return %c0_i32, %c0_i32_0 : i32, i32
  }
  func.func @transform_5(%arg0: i32) -> (i32, i32) {
    %c0_i32 = arith.constant 0 : i32
    %c0_i32_0 = arith.constant 0 : i32
    %c0_i32_1 = arith.constant 0 : i32
    return %c0_i32, %c0_i32_0 : i32, i32
  }
  func.func @transform_6(%arg0: i32) -> (i32, i32) {
    %c0_i32 = arith.constant 0 : i32
    %c0_i32_0 = arith.constant 0 : i32
    %c0_i32_1 = arith.constant 0 : i32
    return %c0_i32, %c0_i32_0 : i32, i32
  }
  func.func @transform_7(%arg0: i32) -> (i32, i32) {
    %c0_i32 = arith.constant 0 : i32
    %c0_i32_0 = arith.constant 0 : i32
    %c0_i32_1 = arith.constant 0 : i32
    return %c0_i32, %c0_i32_0 : i32, i32
  }
  func.func @transform_8(%arg0: i32) -> (i32, i32) {
    %c0_i32 = arith.constant 0 : i32
    %c0_i32_0 = arith.constant 0 : i32
    %c0_i32_1 = arith.constant 0 : i32
    return %c0_i32, %c0_i32_0 : i32, i32
  }
  func.func @transform_9(%arg0: i32) -> (i32, i32, i32) {
    %c0_i32 = arith.constant 0 : i32
    %c0_i32_0 = arith.constant 0 : i32
    %c0_i32_1 = arith.constant 0 : i32
    return %c0_i32, %arg0, %c0_i32_0 : i32, i32, i32
  }
}

</mosaic_0001>

<bundles_post_ra>
// kernel: tpu_custom_call.1
= control target key start
LH: loop header
LB: loop body
LE: loop exit
PB: predicated region body
PF: predicated region fallthrough
CT: control target
= control target key end

     0   :  { %v402_v0 = vmov 0.0   ;;  %vm403_vm0 = vmmov 0   ;;  %vm52_vm1 = vcmask 130048   ;;  %vm120_vm2 = vcmask 261120   ;;  %s509_s1 = inlined_call_operand.vmem [shape: bf16[16,32], index: 1, kind: input, shape index: {}]   ;;  %s510_s0 = inlined_call_operand.vmem [shape: bf16[8,16], index: 0, kind: input, shape index: {}]   ;;  %s511_s3 = inlined_call_operand.vmem [shape: bf16[32,64], index: 3, kind: input, shape index: {}]   ;;  %s512_s5 = inlined_call_operand.vmem [shape: bf16[64,16], index: 5, kind: input, shape index: {}]   ;;  %s513_s2 = inlined_call_operand.vmem [shape: f32[1,32], index: 2, kind: input, shape index: {}]   ;;  %s514_s7 = inlined_call_operand.vmem [shape: bf16[16,4], index: 7, kind: input, shape index: {}]   ;;  %s515_s4 = inlined_call_operand.vmem [shape: f32[1,64], index: 4, kind: input, shape index: {}]   ;;  %s516_s6 = inlined_call_operand.vmem [shape: f32[1,16], index: 6, kind: input, shape index: {}]   ;;  %s517_s8 = inlined_call_operand.vmem [shape: f32[1,4], index: 8, kind: input, shape index: {}]   ;;  %s518_s9 = inlined_call_operand.vmem [shape: f32[2,8,4], index: 9, kind: output, shape index: {}]  }
   0x1   :  { %356 = vmatprep.subr.bf16.mxu0 %v402_v0  ;;  %v390_v1 = vld [vmem:[%s509_s1] sm:$0xff]   ;;  %358 = vmatprep.mubr.msk.bf16.mxu0 %vm403_vm0, %v402_v0  ;;  %v391_v3 = vld [vmem:[%s511_s3 + $0x8] sm:$0xff]   ;;  %v393_v5 = vld [vmem:[%s512_s5 + $0x18] sm:$0xff]   ;;  %vm204_vm3 = vcmask 523264   ;;  %vm307_vm4 = vcmask 31744  }
   0x2   :  { %362 = vmatprep.subr.bf16.mxu1 %v402_v0  ;;  %366 = vmatprep.mubr.msk.bf16.mxu1 %vm403_vm0, %v402_v0  ;;  %v33_v2 = vld [vmem:[%s510_s0] sm:$0xf]  ;;  %v394_v6 = vld [vmem:[%s512_s5 + $0x10] sm:$0xff]   ;;  %v395_v15 = vld [vmem:[%s512_s5 + $0x8] sm:$0xff]  }
   0x3   :  { %357 = vmatpush3.bf16.msra.mxu0 %v390_v1  ;;  %363 = vmatpush3.bf16.msra.mxu1 %v391_v3  ;;  %v392_v4 = vld [vmem:[%s511_s3] sm:$0xff]  }
   0x4   :  { %370 = vmatprep.subr.bf16.mxu0 %v402_v0  ;;  %364 = vmatprep.subr.bf16.mxu1 %v402_v0  ;;  %v327_v7 = vld [vmem:[%s513_s2] ss:$0 sm:$0xff] }
   0x5   :  { %v396_v16 = vld [vmem:[%s512_s5] sm:$0xff]  }
   0x6   :  { %359 = vmatmul.mubr.msk.bf16.vlgmr.msra.gmra.mxu0 %vm52_vm1, %v33_v2  ;;  %v397_v17 = vld [vmem:[%s514_s7] sm:$0xff]  }
   0x7   :  { %378 = vmatprep.mubr.msk.bf16.mxu0 %vm403_vm0, %v402_v0  ;;  %365 = vmatpush3.bf16.msra.mxu1 %v392_v4  ;;  %v330_v18 = vld [vmem:[%s515_s4] ss:$0 sm:$0xff] }
   0x8   :  { %382 = vmatprep.subr.bf16.mxu1 %v402_v0  ;;  %371 = vmatpush3.bf16.msra.mxu0 %v393_v5  ;;  %v334_v26 = vld [vmem:[%s516_s6] ss:$0 sm:$0xff] }
   0x9   :  { %372 = vmatprep.subr.bf16.mxu0 %v402_v0  ;;  %v340_v34 = vld [vmem:[%s517_s8] ss:$0 sm:$0xff] }
   0xc   :  { %373 = vmatpush3.bf16.msra.mxu0 %v394_v6 }
   0xd   :  { %374 = vmatprep.subr.bf16.mxu0 %v402_v0 }
  0x10   :  { %375 = vmatpush3.bf16.msra.mxu0 %v395_v15 }
  0x11   :  { %376 = vmatprep.subr.bf16.mxu0 %v402_v0 }
  0x14   :  { %377 = vmatpush3.bf16.msra.mxu0 %v396_v16 }
  0xc6   :  { %v90_v8 = vpop.f32.mrf.mxu0 }
  0xc7   :  { %v91_v9 = vadd.f32 %v327_v7, %v90_v8 }
  0xc8   :  { %v360_v10 = vpop.f32.mrf.mxu0 }
  0xc9   :  { %v96_v11 = vmax.f32 %v91_v9, 0.0 }
  0xca   :  { %v93_v12 = vpop.f32.mrf.mxu0 }
  0xcb   :  { %v97_v13 = vpack.c.bf16 %v96_v11, %v96_v11 }
  0xcc   :  { %v361_v14 = vpop.f32.mrf.mxu0 }
  0xcd   :  { %367 = vmatmul.mubr.msk.bf16.vlgmr.msra.gmra.mxu1 %vm120_vm2, %v97_v13 }
  0xce   :  { %384 = vmatprep.mubr.msk.bf16.mxu1 %vm403_vm0, %v402_v0  ;;  %383 = vmatpush3.bf16.msra.mxu1 %v397_v17 }
 0x18d   :  { %v158_v19 = vpop.f32.mrf.mxu1 }
 0x18e   :  { %v159_v20 = vadd.f32 %v330_v18, %v158_v19 }
 0x18f   :  { %v368_v21 = vpop.f32.mrf.mxu1 }
 0x190   :  { %v164_v22 = vmax.f32 %v159_v20, 0.0 }
 0x191   :  { %v161_v23 = vpop.f32.mrf.mxu1 }
 0x192   :  { %v165_v24 = vpack.c.bf16 %v164_v22, %v164_v22 }
 0x193   :  { %v369_v25 = vpop.f32.mrf.mxu1 }
 0x194   :  { %379 = vmatmul.mubr.msk.bf16.vlgmr.msra.gmra.mxu0 %vm204_vm3, %v165_v24 }
 0x254   :  { %v242_v27 = vpop.f32.mrf.mxu0 }
 0x255   :  { %v243_v28 = vadd.f32 %v334_v26, %v242_v27 }
 0x256   :  { %v380_v29 = vpop.f32.mrf.mxu0 }
 0x257   :  { %v248_v30 = vmax.f32 %v243_v28, 0.0 }
 0x258   :  { %v245_v31 = vpop.f32.mrf.mxu0 }
 0x259   :  { %v249_v32 = vpack.c.bf16 %v248_v30, %v248_v30 }
 0x25a   :  { %v381_v33 = vpop.f32.mrf.mxu0 }
 0x25b   :  { %385 = vmatmul.mubr.msk.bf16.vlgmr.msra.gmra.mxu1 %vm52_vm1, %v249_v32 }
 0x31b   :  { %v301_v35 = vpop.f32.mrf.mxu1 }
 0x31c   :  { %v302_v36 = vadd.f32 %v340_v34, %v301_v35 }
 0x31d   :  { %v386_v37 = vpop.f32.mrf.mxu1 }
 0x31e   :  { %v308_v38 = vsel %vm307_vm4, %v302_v36, -inf  ;;  %320 = vst.msk [vmem:[%s518_s9] sm:$0xff] %vm307_vm4, %v302_v36 }
 0x31f   :  { %309 = vmax.xlane.f32.xlu0 %v308_v38  ;;  %v304_v39 = vpop.f32.mrf.mxu1 }
 0x321   :  { %v387_v40 = vpop.f32.mrf.mxu1 }
 0x3a8   :  { %v310_v41 = vpop.xlane.xlu0 %309 }
 0x3a9   :  { %v311_v42 = vsub.f32 %v302_v36, %v310_v41 }
 0x3ab   :  { %v312_v43 = vmul.f32 1.442695, %v311_v42 }
 0x3ad   :  { %398 = vpow2.f32 %v312_v43 }
 0x3ba   :  { %v399_v44 = vpop.eup %398 }
 0x3bb   :  { %v314_v45 = vsel %vm307_vm4, %v399_v44, 0.0 }
 0x3bc   :  { %315 = vadd.xlane.f32.xlu0 %v314_v45 }
 0x445   :  { %v316_v46 = vpop.xlane.xlu0 %315 }
 0x446   :  { %400 = vlog2.f32 %v316_v46 }
 0x453   :  { %v401_v47 = vpop.eup %400 }
 0x454   :  { %v318_v48 = vmul.f32 0.6931472, %v401_v47 }
 0x456   :  { %v319_v49 = vsub.f32 %v311_v42, %v318_v48 }
 0x458   :  { %343 = vst.msk [vmem:[%s518_s9 + $0x8] sm:$0xff] %vm307_vm4, %v319_v49 }

</bundles_post_ra>
